<compile_context>
chip_gen: v6e
topology: v6e:2x2x1
jax: 0.10.0
libtpu: 0.0.40
codegen_flags: <defaults>
</compile_context>

<pallas_src>
import jax
import jax.numpy as jnp
from jax.experimental import pallas as pl
from jax.experimental.pallas import tpu as pltpu


def _round_up(x: int, m: int) -> int:
    return (x + m - 1) // m * m


def _f_noise(n):
    # torch: sign(noise) * sqrt(abs(noise))
    return jnp.sign(n) * jnp.sqrt(jnp.abs(n))


# ---------------------------------------------------------------------------
# Kernels
# ---------------------------------------------------------------------------

def _noisy_linear_kernel_fused(x_ref, mu_wt_ref, sigma_wt_ref, f_in_ref,
                               f_out_ref, bias_ref, o_ref):
    """No-K-grid fast path: the whole reduction fits in one tile.

    x_ref        : [tm, INp]  f32   activations (full K)
    mu_wt_ref    : [INp, tn]  wdt   mu_w^T tile
    sigma_wt_ref : [INp, tn]  wdt   sigma_w^T tile
    f_in_ref     : [1,  INp]  f32   f(noise_in)                (invariant)
    f_out_ref    : [nj, tn]   f32   f(noise_out), row per j    (invariant)
    bias_ref     : [nj, tn]   f32   mu_b + sigma_b*f(noise_out)(invariant)
    o_ref        : [tm, tn]   output tile
    """
    j = pl.program_id(1)
    x = x_ref[...].astype(jnp.float32)
    xn = x * f_in_ref[...]                       # fold input-side noise into x
    wd = mu_wt_ref.dtype
    p_mu = jnp.dot(x.astype(wd), mu_wt_ref[...],
                   preferred_element_type=jnp.float32)
    p_sig = jnp.dot(xn.astype(wd), sigma_wt_ref[...],
                    preferred_element_type=jnp.float32)
    f_out = f_out_ref[pl.ds(j, 1), :]            # (1, tn) row for this j tile
    bias = bias_ref[pl.ds(j, 1), :]
    o_ref[...] = (p_mu + p_sig * f_out + bias).astype(o_ref.dtype)


def _noisy_linear_kernel_kacc(x_ref, mu_wt_ref, sigma_wt_ref, f_in_ref,
                              f_out_ref, bias_ref, o_ref,
                              acc_mu_ref, acc_sig_ref):
    """K-tiled path: accumulate over the in_features grid axis.

    x_ref        : [tm, tk]   f32   activation tile
    mu_wt_ref    : [tk, tn]   wdt   mu_w^T tile
    sigma_wt_ref : [tk, tn]   wdt   sigma_w^T tile
    f_in_ref     : [nk, tk]   f32   f(noise_in), row per k     (invariant)
    f_out_ref    : [nj, tn]   f32   f(noise_out), row per j    (invariant)
    bias_ref     : [nj, tn]   f32   effective bias, row per j  (invariant)
    o_ref        : [tm, tn]   output tile (written once, last K step)
    acc_mu_ref   : [tm, tn]   f32   mu-path accumulator
    acc_sig_ref  : [tm, tn]   f32   sigma-path accumulator (f_out applied once
                                    in the finalize branch, not per K step)
    """
    j = pl.program_id(1)
    k = pl.program_id(2)

    @pl.when(k == 0)
    def _init():
        acc_mu_ref[...] = jnp.zeros_like(acc_mu_ref)
        acc_sig_ref[...] = jnp.zeros_like(acc_sig_ref)

    x = x_ref[...].astype(jnp.float32)
    xn = x * f_in_ref[pl.ds(k, 1), :]            # (1, tk) row for this k tile
    wd = mu_wt_ref.dtype
    acc_mu_ref[...] += jnp.dot(x.astype(wd), mu_wt_ref[...],
                               preferred_element_type=jnp.float32)
    acc_sig_ref[...] += jnp.dot(xn.astype(wd), sigma_wt_ref[...],
                                preferred_element_type=jnp.float32)

    @pl.when(k == pl.num_programs(2) - 1)
    def _finalize():
        f_out = f_out_ref[pl.ds(j, 1), :]
        bias = bias_ref[pl.ds(j, 1), :]
        o_ref[...] = (acc_mu_ref[...] + acc_sig_ref[...] * f_out
                      + bias).astype(o_ref.dtype)


# ---------------------------------------------------------------------------
# Parameter layout (done ONCE, not per forward call)
# ---------------------------------------------------------------------------

def noisy_linear_prepare(mu_w, sigma_w, mu_b=None, sigma_b=None, *,
                         weight_dtype=jnp.bfloat16, max_tk=2048, max_tn=512):
    """Pre-transpose / cast / pad the weights to the kernel layout.

    Call once at init (or at the optimizer boundary); the returned dict feeds
    `noisy_linear_apply` directly, so the hot path streams the weights from
    HBM exactly once with no per-call re-layout pass.
    """
    OUT, IN = mu_w.shape
    assert sigma_w.shape == (OUT, IN)

    INr = _round_up(IN, 128)
    OUTr = _round_up(OUT, 128)
    tk = INr if INr <= max_tk else max_tk
    tn = OUTr if OUTr <= max_tn else max_tn
    # v7x megacore guard: if K must be tiled but OUT would be a single block,
    # split OUT so the "parallel" j axis has >= 2 blocks (feeds both TCs).
    if tk < INr and tn == OUTr and OUTr >= 256:
        tn = _round_up(OUTr // 2, 128)

    INp = _round_up(IN, tk)
    OUTp = _round_up(OUT, tn)

    pad_w = ((0, INp - IN), (0, OUTp - OUT))
    mu_wt = jnp.pad(mu_w.T.astype(weight_dtype), pad_w)        # [INp, OUTp]
    sigma_wt = jnp.pad(sigma_w.T.astype(weight_dtype), pad_w)  # [INp, OUTp]

    return {
        "mu_wt": mu_wt,
        "sigma_wt": sigma_wt,
        "mu_b": None if mu_b is None else mu_b.astype(jnp.float32),
        "sigma_b": None if sigma_b is None else sigma_b.astype(jnp.float32),
        "in_features": IN,
        "out_features": OUT,
        "tk": tk,
        "tn": tn,
    }


def _vmem_limit_bytes(tm, tk, tn, INp, OUTp, wbytes, out_bytes, fast):
    """Derive a vmem limit from the actual tile footprint (v7x-safe)."""
    streamed = tm * tk * 4 + 2 * tk * tn * wbytes + tm * tn * out_bytes
    invariant = INp * 4 + 2 * OUTp * 4
    acc = 0 if fast else 2 * tm * tn * 4
    total = 2 * (streamed + invariant) + acc          # x2: double buffering
    return int(min(max(total + (4 << 20), 16 << 20), 48 << 20))


# ---------------------------------------------------------------------------
# Forward
# ---------------------------------------------------------------------------

def noisy_linear_apply(params, x, f_in, f_out, *, tm_cap=512):
    """Training-mode NoisyLinear forward with pre-laid-out parameters.

    y = x @ (mu_w + sigma_w * outer(f_out, f_in)).T + (mu_b + sigma_b * f_out)
    """
    IN = params["in_features"]
    OUT = params["out_features"]
    mu_wt = params["mu_wt"]
    sigma_wt = params["sigma_wt"]
    INp, OUTp = mu_wt.shape
    tk, tn = params["tk"], params["tn"]

    B, IN2 = x.shape
    assert IN2 == IN
    assert f_in.shape == (IN,) and f_out.shape == (OUT,)

    f32 = jnp.float32
    # Batch tile: cover the whole (8-padded) batch when it is small so the
    # weights are streamed exactly once (memory-bound regime); do NOT pad tiny
    # batches up to 128.
    Bp = _round_up(B, 8)
    if Bp <= tm_cap:
        tm = Bp
    else:
        # TODO(synk): very large batches re-stream the weights once per batch
        # block; revisit grid ordering if that ever becomes the regime.
        tm = 256
        Bp = _round_up(B, tm)

    n_k = INp // tk
    n_j = OUTp // tn
    n_i = Bp // tm
    fast = (n_k == 1)

    # Cheap O(B*IN) / O(IN) / O(OUT) per-call glue (fuses in XLA).
    x_p = jnp.pad(x, ((0, Bp - B), (0, INp - IN)))
    f_in_2d = jnp.pad(f_in.astype(f32), (0, INp - IN)).reshape(n_k, tk)
    f_out_2d = jnp.pad(f_out.astype(f32), (0, OUTp - OUT)).reshape(n_j, tn)
    if params["mu_b"] is not None:
        b_eff = params["mu_b"] + params["sigma_b"] * f_out.astype(f32)
    else:
        b_eff = jnp.zeros((OUT,), f32)
    bias_2d = jnp.pad(b_eff, (0, OUTp - OUT)).reshape(n_j, tn)

    wbytes = jnp.dtype(mu_wt.dtype).itemsize
    out_bytes = jnp.dtype(x.dtype).itemsize
    vmem_limit = _vmem_limit_bytes(tm, tk, tn, INp, OUTp, wbytes, out_bytes,
                                   fast)

    if fast:
        kernel = _noisy_linear_kernel_fused
        grid = (n_i, n_j)
        in_specs = [
            pl.BlockSpec((tm, INp), lambda i, j: (i, 0)),    # x (full K)
            pl.BlockSpec((INp, tn), lambda i, j: (0, j)),    # mu_w^T
            pl.BlockSpec((INp, tn), lambda i, j: (0, j)),    # sigma_w^T
            pl.BlockSpec((n_k, tk), lambda i, j: (0, 0)),    # f(noise_in)
            pl.BlockSpec((n_j, tn), lambda i, j: (0, 0)),    # f(noise_out)
            pl.BlockSpec((n_j, tn), lambda i, j: (0, 0)),    # effective bias
        ]
        out_specs = pl.BlockSpec((tm, tn), lambda i, j: (i, j))
        scratch = []
        dim_sem = ("parallel", "parallel")
    else:
        kernel = _noisy_linear_kernel_kacc
        grid = (n_i, n_j, n_k)
        in_specs = [
            pl.BlockSpec((tm, tk), lambda i, j, k: (i, k)),   # x
            pl.BlockSpec((tk, tn), lambda i, j, k: (k, j)),   # mu_w^T
            pl.BlockSpec((tk, tn), lambda i, j, k: (k, j)),   # sigma_w^T
            pl.BlockSpec((n_k, tk), lambda i, j, k: (0, 0)),  # f(noise_in)
            pl.BlockSpec((n_j, tn), lambda i, j, k: (0, 0)),  # f(noise_out)
            pl.BlockSpec((n_j, tn), lambda i, j, k: (0, 0)),  # effective bias
        ]
        out_specs = pl.BlockSpec((tm, tn), lambda i, j, k: (i, j))
        scratch = [pltpu.VMEM((tm, tn), jnp.float32),
                   pltpu.VMEM((tm, tn), jnp.float32)]
        dim_sem = ("parallel", "parallel", "arbitrary")

    out = pl.pallas_call(
        kernel,
        out_shape=jax.ShapeDtypeStruct((Bp, OUTp), x.dtype),
        grid_spec=pltpu.PrefetchScalarGridSpec(
            num_scalar_prefetch=0,
            grid=grid,
            in_specs=in_specs,
            out_specs=out_specs,
            scratch_shapes=scratch,
        ),
        compiler_params=pltpu.CompilerParams(
            dimension_semantics=dim_sem,
            vmem_limit_bytes=vmem_limit,
        ),
    )(x_p, mu_wt, sigma_wt, f_in_2d, f_out_2d, bias_2d)

    return out[:B, :OUT]


# ---------------------------------------------------------------------------
# Demo / correctness check
# ---------------------------------------------------------------------------

if __name__ == "__main__":
    in_features = 200
    out_features = 250
    batch = 6
    sigma_init = 0.5
    dtype = jnp.float32

    key = jax.random.PRNGKey(0)
    k_x, k_muw, k_mub, k_nin, k_nout = jax.random.split(key, 5)

    # Deterministic parameter init (mirrors reset_parameters()).
    mu_range = 1.0 / (in_features ** 0.5)
    sigma_val = sigma_init / (in_features ** 0.5)
    mu_w = jax.random.uniform(k_muw, (out_features, in_features),
                              minval=-mu_range, maxval=mu_range, dtype=dtype)
    sigma_w = jnp.full((out_features, in_features), sigma_val, dtype=dtype)
    mu_b = jax.random.uniform(k_mub, (out_features,),
                              minval=-mu_range, maxval=mu_range, dtype=dtype)
    sigma_b = jnp.full((out_features,), sigma_val, dtype=dtype)

    # Deterministic factorized noise (mirrors reset_noise()).
    f_in = _f_noise(jax.random.normal(k_nin, (in_features,), dtype=dtype))
    f_out = _f_noise(jax.random.normal(k_nout, (out_features,), dtype=dtype))

    x = jax.random.normal(k_x, (batch, in_features), dtype=dtype)

    # Pure-JAX f32 reference (materialized noisy weight, as in the torch module).
    eps_w = jnp.outer(f_out, f_in)
    w_eff = mu_w + sigma_w * eps_w
    b_eff_ref = mu_b + sigma_b * f_out
    y_ref = x @ w_eff.T + b_eff_ref

    # 1) Production path: persistent bf16 layout, single-block fast kernel
    #    (grid (1, 1), no K axis, no scratch accumulator).
    params_fast = noisy_linear_prepare(mu_w, sigma_w, mu_b, sigma_b,
                                       weight_dtype=jnp.bfloat16)
    y_fast = jax.block_until_ready(
        noisy_linear_apply(params_fast, x, f_in, f_out))

    # 2) Tiled path: force small tiles so the K-accumulating kernel runs
    #    (grid (1, 2, 2) with pl.when init/finalize and dual accumulators).
    params_tiled = noisy_linear_prepare(mu_w, sigma_w, mu_b, sigma_b,
                                        weight_dtype=jnp.float32,
                                        max_tk=128, max_tn=128)
    y_tiled = jax.block_until_ready(
        noisy_linear_apply(params_tiled, x, f_in, f_out))

    assert y_fast.shape == (batch, out_features)
    assert y_tiled.shape == (batch, out_features)

    err_fast = float(jnp.max(jnp.abs(y_fast - y_ref)))
    err_tiled = float(jnp.max(jnp.abs(y_tiled - y_ref)))
    # bf16 MXU operands with f32 accumulation: bf16-level tolerance.
    assert jnp.allclose(y_fast, y_ref, atol=5e-2, rtol=5e-2), \
        f"fast path max abs err {err_fast}"
    assert jnp.allclose(y_tiled, y_ref, atol=5e-2, rtol=5e-2), \
        f"tiled path max abs err {err_tiled}"

    print("KERNEL_OK")
</pallas_src>

<mosaic_0001>
module attributes {stable_mosaic.version = 11 : i64} {
  func.func @_noisy_linear_kernel_fused(%arg0: i32, %arg1: i32, %arg2: memref<8x256xf32, #tpu.memory_space<vmem>>, %arg3: memref<256x256xbf16, #tpu.memory_space<vmem>>, %arg4: memref<256x256xbf16, #tpu.memory_space<vmem>>, %arg5: memref<1x256xf32, #tpu.memory_space<vmem>>, %arg6: memref<1x256xf32, #tpu.memory_space<vmem>>, %arg7: memref<1x256xf32, #tpu.memory_space<vmem>>, %arg8: memref<8x256xf32, #tpu.memory_space<vmem>>) attributes {dimension_semantics = [#tpu.dimension_semantics<parallel>, #tpu.dimension_semantics<parallel>], iteration_bounds = array<i64: 1, 1>, scalar_prefetch = 0 : i64, scratch_operands = 0 : i64, tpu.core_type = #tpu.core_type<tc>, window_params = [{transform_indices = @transform_0, window_bounds = array<i64: 8, 256>}, {transform_indices = @transform_1, window_bounds = array<i64: 256, 256>}, {transform_indices = @transform_2, window_bounds = array<i64: 256, 256>}, {pipeline_mode = #tpu.pipeline_mode<synchronous>, transform_indices = @transform_3, window_bounds = array<i64: 1, 256>}, {pipeline_mode = #tpu.pipeline_mode<synchronous>, transform_indices = @transform_4, window_bounds = array<i64: 1, 256>}, {pipeline_mode = #tpu.pipeline_mode<synchronous>, transform_indices = @transform_5, window_bounds = array<i64: 1, 256>}, {transform_indices = @transform_6, window_bounds = array<i64: 8, 256>}]} {
    %c0 = arith.constant 0 : index
    %c0_0 = arith.constant 0 : index
    %0 = vector.load %arg2[%c0, %c0_0] : memref<8x256xf32, #tpu.memory_space<vmem>>, vector<8x256xf32>
    %c0_1 = arith.constant 0 : index
    %c0_2 = arith.constant 0 : index
    %1 = vector.load %arg5[%c0_1, %c0_2] : memref<1x256xf32, #tpu.memory_space<vmem>>, vector<1x256xf32>
    %2 = vector.broadcast %1 : vector<1x256xf32> to vector<8x256xf32>
    %3 = arith.mulf %0, %2 : vector<8x256xf32>
    %4 = arith.truncf %0 : vector<8x256xf32> to vector<8x256xbf16>
    %c0_3 = arith.constant 0 : index
    %c0_4 = arith.constant 0 : index
    %5 = vector.load %arg3[%c0_3, %c0_4] : memref<256x256xbf16, #tpu.memory_space<vmem>>, vector<256x256xbf16>
    %cst = arith.constant dense<0.000000e+00> : vector<8x256xf32>
    %6 = tpu.matmul %4, %5, %cst {dimension_numbers = #tpu.dot_dimension_numbers<[1], [0], [0], [1], [0, 0, 1, 1], [], []>} : vector<8x256xbf16>, vector<256x256xbf16>, vector<8x256xf32> -> vector<8x256xf32>
    %7 = arith.truncf %3 : vector<8x256xf32> to vector<8x256xbf16>
    %c0_5 = arith.constant 0 : index
    %c0_6 = arith.constant 0 : index
    %8 = vector.load %arg4[%c0_5, %c0_6] : memref<256x256xbf16, #tpu.memory_space<vmem>>, vector<256x256xbf16>
    %cst_7 = arith.constant dense<0.000000e+00> : vector<8x256xf32>
    %9 = tpu.matmul %7, %8, %cst_7 {dimension_numbers = #tpu.dot_dimension_numbers<[1], [0], [0], [1], [0, 0, 1, 1], [], []>} : vector<8x256xbf16>, vector<256x256xbf16>, vector<8x256xf32> -> vector<8x256xf32>
    %10 = arith.index_cast %arg1 : i32 to index
    %c0_8 = arith.constant 0 : index
    %11 = vector.load %arg6[%10, %c0_8] : memref<1x256xf32, #tpu.memory_space<vmem>>, vector<1x256xf32>
    %12 = arith.index_cast %arg1 : i32 to index
    %c0_9 = arith.constant 0 : index
    %13 = vector.load %arg7[%12, %c0_9] : memref<1x256xf32, #tpu.memory_space<vmem>>, vector<1x256xf32>
    %14 = vector.broadcast %11 : vector<1x256xf32> to vector<8x256xf32>
    %15 = arith.mulf %9, %14 : vector<8x256xf32>
    %16 = arith.addf %6, %15 : vector<8x256xf32>
    %17 = vector.broadcast %13 : vector<1x256xf32> to vector<8x256xf32>
    %18 = arith.addf %16, %17 : vector<8x256xf32>
    %c0_10 = arith.constant 0 : index
    %c0_11 = arith.constant 0 : index
    %19 = vector.load %arg8[%c0_10, %c0_11] : memref<8x256xf32, #tpu.memory_space<vmem>>, vector<8x256xf32>
    tpu.vector_store %arg8[%c0_10, %c0_11], %18 {strides = array<i32>} : memref<8x256xf32, #tpu.memory_space<vmem>>, vector<8x256xf32>,
    return
  }
  func.func @transform_0(%arg0: i32, %arg1: i32) -> (i32, i32) {
    %c0_i32 = arith.constant 0 : i32
    %c0_i32_0 = arith.constant 0 : i32
    return %arg0, %c0_i32 : i32, i32
  }
  func.func @transform_1(%arg0: i32, %arg1: i32) -> (i32, i32) {
    %c0_i32 = arith.constant 0 : i32
    %c0_i32_0 = arith.constant 0 : i32
    return %c0_i32, %arg1 : i32, i32
  }
  func.func @transform_2(%arg0: i32, %arg1: i32) -> (i32, i32) {
    %c0_i32 = arith.constant 0 : i32
    %c0_i32_0 = arith.constant 0 : i32
    return %c0_i32, %arg1 : i32, i32
  }
  func.func @transform_3(%arg0: i32, %arg1: i32) -> (i32, i32) {
    %c0_i32 = arith.constant 0 : i32
    %c0_i32_0 = arith.constant 0 : i32
    %c0_i32_1 = arith.constant 0 : i32
    return %c0_i32, %c0_i32_0 : i32, i32
  }
  func.func @transform_4(%arg0: i32, %arg1: i32) -> (i32, i32) {
    %c0_i32 = arith.constant 0 : i32
    %c0_i32_0 = arith.constant 0 : i32
    %c0_i32_1 = arith.constant 0 : i32
    return %c0_i32, %c0_i32_0 : i32, i32
  }
  func.func @transform_5(%arg0: i32, %arg1: i32) -> (i32, i32) {
    %c0_i32 = arith.constant 0 : i32
    %c0_i32_0 = arith.constant 0 : i32
    %c0_i32_1 = arith.constant 0 : i32
    return %c0_i32, %c0_i32_0 : i32, i32
  }
  func.func @transform_6(%arg0: i32, %arg1: i32) -> (i32, i32) {
    %c0_i32 = arith.constant 0 : i32
    return %arg0, %arg1 : i32, i32
  }
}

</mosaic_0001>

<bundles_post_ra>
// kernel: tpu_custom_call.1
= control target key start
LH: loop header
LB: loop body
LE: loop exit
PB: predicated region body
PF: predicated region fallthrough
CT: control target
= control target key end

     0   :  { %11 = vsyncpa [#allocation3], 0  ;;  %s917_s0 = inlined_call_operand.hbm [shape: f32[8,256], index: 0, kind: input, shape index: {}]   ;;  %s918_s1 = inlined_call_operand.hbm [shape: bf16[256,256], index: 1, kind: input, shape index: {}]   ;;  %s919_s2 = inlined_call_operand.hbm [shape: bf16[256,256], index: 2, kind: input, shape index: {}]   ;;  %s920_s3 = inlined_call_operand.vmem [shape: f32[1,256], index: 3, kind: input, shape index: {}]   ;;  %s921_s4 = inlined_call_operand.vmem [shape: f32[1,256], index: 4, kind: input, shape index: {}]   ;;  %s922_s5 = inlined_call_operand.vmem [shape: f32[1,256], index: 5, kind: input, shape index: {}]   ;;  %s923_s6 = inlined_call_operand.hbm [shape: f32[8,256], index: 6, kind: output, shape index: {}]  }
   0x1   :  { %12 = vsyncpa [#allocation6], 0 }
   0x2   :  { %13 = vsyncpa [#allocation4], 0  ;;  %s850_s21 = smov [#allocation5]  }
   0x3   :  { %s29_s22 = sshll.u32 %s850_s21, 4  ;;  %s30_s22 = int_to_ptr.vmem [resolvable:$true] %s29_s22 }
   0x4   :  { %s772_s23 = scalar_lea.vmem %s30_s22, 4096  ;;  %p777_p1 = scmp.lt.s32.totalorder %s30_s22, %s30_s22 }
   0x5   :  { %p773_p0 = scmp.ne.s32.totalorder %s30_s22, %s772_s23  ;;  %p778_p2 = scmp.lt.s32.totalorder %s772_s23, %s772_s23 }
   0x7   :  { %p779_p3 = por %p778_p2, %p777_p1 }
   0x9   :  { %p780_p4 = pnand %p779_p3, %p773_p0 }
   0xb   :  { %783 = shalt.err (!%p780_p4)
}
   0xc   :  { %s851_s24 = smov 128   ;;  %s852_s25 = smov 8  }
   0xd   :  { %35 = dma.hbm_to_vmem [thread:$0]  %s918_s1, 4096, %s30_s22, [#allocation6], %s851_s24, %s851_s24, %s852_s25  }
   0xe   :  { %s853_s28 = smov [#allocation2]   ;;  %s854_s30 = smov [#allocation7]  }
   0xf   :  { %s20_s29 = sshll.u32 %s853_s28, 4  ;;  %s41_s7 = sshll.u32 %s854_s30, 4  ;;  %s21_s29 = int_to_ptr.vmem [resolvable:$true] %s20_s29  ;;  %s42_s7 = int_to_ptr.vmem [resolvable:$true] %s41_s7 }
  0x10   :  { %s792_s8 = scalar_lea.vmem %s21_s29, 256  ;;  %p797_p6 = scmp.lt.s32.totalorder %s21_s29, %s21_s29 }
  0x11   :  { %p793_p5 = scmp.ne.s32.totalorder %s21_s29, %s792_s8  ;;  %p798_p7 = scmp.lt.s32.totalorder %s792_s8, %s792_s8 }
  0x13   :  { %p799_p8 = por %p798_p7, %p797_p6 }
  0x15   :  { %p800_p9 = pnand %p799_p8, %p793_p5 }
  0x17   :  { %803 = shalt.err (!%p800_p9)
}
  0x18   :  { %23 = dma.hbm_to_vmem [thread:$0]  %s917_s0, 256, %s21_s29, [#allocation3]  }
  0x19   :  { %s812_s11 = scalar_lea.vmem %s42_s7, 4096  ;;  %p817_p11 = scmp.lt.s32.totalorder %s42_s7, %s42_s7 }
  0x1a   :  { %p813_p10 = scmp.ne.s32.totalorder %s42_s7, %s812_s11  ;;  %p818_p12 = scmp.lt.s32.totalorder %s812_s11, %s812_s11 }
  0x1c   :  { %p819_p13 = por %p818_p12, %p817_p11 }
  0x1e   :  { %p820_p0 = pnand %p819_p13, %p813_p10 }
  0x20   :  { %823 = shalt.err (!%p820_p0)
}
  0x21   :  { %47 = dma.hbm_to_vmem [thread:$0]  %s919_s2, 4096, %s42_s7, [#allocation6], %s851_s24, %s851_s24, %s852_s25  }
  0x22   :  { %844 = dma.done.wait [#allocation3], 256  }
  0x23   :  { %845 = vsyncadd [#allocation3], 4294967040 }
  0x24   :  { %846 = dma.done.wait [#allocation6], 8192  }
  0x25   :  { %847 = vsyncadd [#allocation6], 4294959104  ;;  %v668_v0 = vld [vmem:[#allocation7 + $0x74] ss:$8 sps:$4 sm:$0xff]   ;;  %v672_v2 = vld [vmem:[#allocation7 + $0x70] ss:$8 sps:$4 sm:$0xff]   ;;  %v67_v37 = vlaneseq }
  0x26   :  { %v670_v1 = vld [vmem:[#allocation5 + $0x74] ss:$8 sps:$4 sm:$0xff]   ;;  %307 = vmatprep.subr.bf16.mxu0 %v668_v0  ;;  %v673_v3 = vld [vmem:[#allocation5 + $0x70] ss:$8 sps:$4 sm:$0xff]   ;;  %v674_v4 = vld [vmem:[#allocation7 + $0x64] ss:$8 sps:$4 sm:$0xff]  }
  0x27   :  { %526 = vmatprep.subr.bf16.mxu1 %v670_v1  ;;  %308 = vmatpush1.bf16.msra.mxu0 %v672_v2  ;;  %v676_v5 = vld [vmem:[#allocation5 + $0x64] ss:$8 sps:$4 sm:$0xff]   ;;  %v678_v6 = vld [vmem:[#allocation7 + $0x60] ss:$8 sps:$4 sm:$0xff]   ;;  %v680_v8 = vld [vmem:[#allocation7 + $0x54] ss:$8 sps:$4 sm:$0xff]  }
  0x28   :  { %527 = vmatpush1.bf16.msra.mxu1 %v673_v3  ;;  %309 = vmatprep.subr.bf16.mxu0 %v674_v4  ;;  %v679_v7 = vld [vmem:[#allocation5 + $0x60] ss:$8 sps:$4 sm:$0xff]   ;;  %v682_v9 = vld [vmem:[#allocation5 + $0x54] ss:$8 sps:$4 sm:$0xff]   ;;  %v684_v10 = vld [vmem:[#allocation7 + $0x50] ss:$8 sps:$4 sm:$0xff]  }
  0x29   :  { %528 = vmatprep.subr.bf16.mxu1 %v676_v5  ;;  %v685_v11 = vld [vmem:[#allocation5 + $0x50] ss:$8 sps:$4 sm:$0xff]   ;;  %v686_v12 = vld [vmem:[#allocation7 + $0x44] ss:$8 sps:$4 sm:$0xff]   ;;  %v690_v14 = vld [vmem:[#allocation7 + $0x40] ss:$8 sps:$4 sm:$0xff]  }
  0x2a   :  { %v688_v13 = vld [vmem:[#allocation5 + $0x44] ss:$8 sps:$4 sm:$0xff]   ;;  %v691_v15 = vld [vmem:[#allocation5 + $0x40] ss:$8 sps:$4 sm:$0xff]   ;;  %v692_v16 = vld [vmem:[#allocation7 + $0x34] ss:$8 sps:$4 sm:$0xff]  }
  0x2b   :  { %310 = vmatpush1.bf16.msra.mxu0 %v678_v6  ;;  %v694_v17 = vld [vmem:[#allocation5 + $0x34] ss:$8 sps:$4 sm:$0xff]   ;;  %v696_v18 = vld [vmem:[#allocation7 + $0x30] ss:$8 sps:$4 sm:$0xff]   ;;  %v698_v20 = vld [vmem:[#allocation7 + $0x24] ss:$8 sps:$4 sm:$0xff]  }
  0x2c   :  { %529 = vmatpush1.bf16.msra.mxu1 %v679_v7  ;;  %311 = vmatprep.subr.bf16.mxu0 %v680_v8  ;;  %v697_v19 = vld [vmem:[#allocation5 + $0x30] ss:$8 sps:$4 sm:$0xff]   ;;  %v700_v21 = vld [vmem:[#allocation5 + $0x24] ss:$8 sps:$4 sm:$0xff]   ;;  %v702_v22 = vld [vmem:[#allocation7 + $0x20] ss:$8 sps:$4 sm:$0xff]  }
  0x2d   :  { %530 = vmatprep.subr.bf16.mxu1 %v682_v9  ;;  %v703_v23 = vld [vmem:[#allocation5 + $0x20] ss:$8 sps:$4 sm:$0xff]   ;;  %v704_v24 = vld [vmem:[#allocation7 + $0x14] ss:$8 sps:$4 sm:$0xff]   ;;  %v708_v26 = vld [vmem:[#allocation7 + $0x10] ss:$8 sps:$4 sm:$0xff]  }
  0x2e   :  { %v706_v25 = vld [vmem:[#allocation5 + $0x14] ss:$8 sps:$4 sm:$0xff]   ;;  %v709_v27 = vld [vmem:[#allocation5 + $0x10] ss:$8 sps:$4 sm:$0xff]   ;;  %v710_v28 = vld [vmem:[#allocation7 + $0x4] ss:$8 sps:$4 sm:$0xff]  }
  0x2f   :  { %312 = vmatpush1.bf16.msra.mxu0 %v684_v10  ;;  %v712_v29 = vld [vmem:[#allocation5 + $0x4] ss:$8 sps:$4 sm:$0xff]   ;;  %v714_v30 = vld [vmem:[#allocation7] ss:$8 sps:$4 sm:$0xff]   ;;  %v716_v32 = vld [vmem:[#allocation7 + $0xf4] ss:$8 sps:$4 sm:$0xff]  }
  0x30   :  { %531 = vmatpush1.bf16.msra.mxu1 %v685_v11  ;;  %313 = vmatprep.subr.bf16.mxu0 %v686_v12  ;;  %v715_v31 = vld [vmem:[#allocation5] ss:$8 sps:$4 sm:$0xff]   ;;  %v718_v33 = vld [vmem:[#allocation5 + $0xf4] ss:$8 sps:$4 sm:$0xff]   ;;  %v720_v34 = vld [vmem:[#allocation7 + $0xf0] ss:$8 sps:$4 sm:$0xff]  }
  0x31   :  { %532 = vmatprep.subr.bf16.mxu1 %v688_v13  ;;  %v721_v35 = vld [vmem:[#allocation5 + $0xf0] ss:$8 sps:$4 sm:$0xff]   ;;  %v722_v36 = vld [vmem:[#allocation7 + $0xe4] ss:$8 sps:$4 sm:$0xff]   ;;  %v726_v39 = vld [vmem:[#allocation7 + $0xe0] ss:$8 sps:$4 sm:$0xff]  }
  0x32   :  { %v724_v38 = vld [vmem:[#allocation5 + $0xe4] ss:$8 sps:$4 sm:$0xff]   ;;  %v727_v40 = vld [vmem:[#allocation5 + $0xe0] ss:$8 sps:$4 sm:$0xff]   ;;  %v728_v41 = vld [vmem:[#allocation7 + $0xd4] ss:$8 sps:$4 sm:$0xff]  }
  0x33   :  { %314 = vmatpush1.bf16.msra.mxu0 %v690_v14  ;;  %v68_v42 = vshrl.u32 %v67_v37, 7  ;;  %v730_v43 = vld [vmem:[#allocation5 + $0xd4] ss:$8 sps:$4 sm:$0xff]   ;;  %v732_v44 = vld [vmem:[#allocation7 + $0xd0] ss:$8 sps:$4 sm:$0xff]  }
  0x34   :  { %533 = vmatpush1.bf16.msra.mxu1 %v691_v15  ;;  %315 = vmatprep.subr.bf16.mxu0 %v692_v16  ;;  %v733_v45 = vld [vmem:[#allocation5 + $0xd0] ss:$8 sps:$4 sm:$0xff]   ;;  %v734_v46 = vld [vmem:[#allocation7 + $0xc4] ss:$8 sps:$4 sm:$0xff]   ;;  %v738_v52 = vld [vmem:[#allocation7 + $0xc0] ss:$8 sps:$4 sm:$0xff]  }
  0x35   :  { %534 = vmatprep.subr.bf16.mxu1 %v694_v17  ;;  %v900_v47 = vsub.s32 1, %v68_v42  ;;  %v736_v48 = vld [vmem:[#allocation5 + $0xc4] ss:$8 sps:$4 sm:$0xff]   ;;  %v64_v49 = vld [vmem:[#allocation2 + $0x8] sm:$0xff]  ;;  %v65_v50 = vld [vmem:[%s920_s3] sm:$0x3] }
  0x36   :  { %v80_v51 = vpack.c.bf16 %v64_v49, %v64_v49  ;;  %v739_v53 = vld [vmem:[#allocation5 + $0xc0] ss:$8 sps:$4 sm:$0xff]   ;;  %v740_v55 = vld [vmem:[#allocation7 + $0xb4] ss:$8 sps:$4 sm:$0xff]   ;;  %v744_v58 = vld [vmem:[#allocation7 + $0xb0] ss:$8 sps:$4 sm:$0xff]  }
  0x37   :  { %316 = vmatpush1.bf16.msra.mxu0 %v696_v18  ;;  %v74_v54 = vrot.slane %v65_v50, %v900_v47  ;;  %v742_v56 = vld [vmem:[#allocation5 + $0xb4] ss:$8 sps:$4 sm:$0xff]   ;;  %v745_v59 = vld [vmem:[#allocation5 + $0xb0] ss:$8 sps:$4 sm:$0xff]   ;;  %v746_v61 = vld [vmem:[#allocation7 + $0xa4] ss:$8 sps:$4 sm:$0xff]  }
  0x38   :  { %535 = vmatpush1.bf16.msra.mxu1 %v697_v19  ;;  %317 = vmatprep.subr.bf16.mxu0 %v698_v20  ;;  %v748_v62 = vld [vmem:[#allocation5 + $0xa4] ss:$8 sps:$4 sm:$0xff]   ;;  %v69_v63 = vsub.s32 0, %v68_v42  ;;  %v750_v0 = vld [vmem:[#allocation7 + $0xa0] ss:$8 sps:$4 sm:$0xff]   ;;  %v63_v7 = vld [vmem:[#allocation2] sm:$0xff] }
  0x39   :  { %536 = vmatprep.subr.bf16.mxu1 %v700_v21  ;;  %v78_v57 = vmul.f32 %v74_v54, %v64_v49  ;;  %558 = vmatprep.mubr.bf16.mxu1 %v80_v51  ;;  %v751_v1 = vld [vmem:[#allocation5 + $0xa0] ss:$8 sps:$4 sm:$0xff]   ;;  %v752_v2 = vld [vmem:[#allocation7 + $0x94] ss:$8 sps:$4 sm:$0xff]   ;;  %v756_v5 = vld [vmem:[#allocation7 + $0x90] ss:$8 sps:$4 sm:$0xff]   ;;  %v79_v14 = vpack.c.bf16 %v63_v7, %v63_v7 }
  0x3a   :  { %v754_v3 = vld [vmem:[#allocation5 + $0x94] ss:$8 sps:$4 sm:$0xff]   ;;  %v70_v4 = vrot.slane %v65_v50, %v69_v63  ;;  %v757_v6 = vld [vmem:[#allocation5 + $0x90] ss:$8 sps:$4 sm:$0xff]   ;;  %v758_v8 = vld [vmem:[#allocation7 + $0x84] ss:$8 sps:$4 sm:$0xff]  }
  0x3b   :  { %318 = vmatpush1.bf16.msra.mxu0 %v702_v22  ;;  %v114_v60 = vpack.c.bf16 %v78_v57, %v78_v57  ;;  %v760_v9 = vld [vmem:[#allocation5 + $0x84] ss:$8 sps:$4 sm:$0xff]   ;;  %v762_v11 = vld [vmem:[#allocation7 + $0x80] ss:$8 sps:$4 sm:$0xff]   ;;  %v350_v15 = vld [vmem:[%s921_s4] sm:$0x3] }
  0x3c   :  { %537 = vmatpush1.bf16.msra.mxu1 %v703_v23  ;;  %319 = vmatprep.subr.bf16.mxu0 %v704_v24  ;;  %v77_v10 = vmul.f32 %v70_v4, %v63_v7  ;;  %v763_v12 = vld [vmem:[#allocation5 + $0x80] ss:$8 sps:$4 sm:$0xff]   ;;  %v357_v16 = vrot.slane %v350_v15, %v69_v63  ;;  %v352_v17 = vld [vmem:[%s922_s5] sm:$0x3]  ;;  %v361_v18 = vrot.slane %v350_v15, %v900_v47  ;;  %s855_s4 = smov [#allocation8]  }
  0x3d   :  { %538 = vmatprep.subr.bf16.mxu1 %v706_v25  ;;  %339 = vmatprep.mubr.bf16.mxu0 %v114_v60  ;;  %v571_v22 = vrot.slane %v352_v17, %v69_v63  ;;  %s588_s16 = sshll.u32 %s855_s4, 4  ;;  %s589_s16 = int_to_ptr.vmem [resolvable:$true] %s588_s16 }
  0x3e   :  { %v113_v13 = vpack.c.bf16 %v77_v10, %v77_v10  ;;  %s824_s5 = scalar_lea.vmem %s589_s16, 256  ;;  %p829_p2 = scmp.lt.s32.totalorder %s589_s16, %s589_s16 }
  0x3f   :  { %320 = vmatpush1.bf16.msra.mxu0 %v708_v26  ;;  %p825_p1 = scmp.ne.s32.totalorder %s589_s16, %s824_s5  ;;  %p830_p3 = scmp.lt.s32.totalorder %s824_s5, %s824_s5 }
  0x40   :  { %539 = vmatpush1.bf16.msra.mxu1 %v709_v27  ;;  %321 = vmatprep.subr.bf16.mxu0 %v710_v28  ;;  %v575_v27 = vrot.slane %v352_v17, %v900_v47 }
  0x41   :  { %540 = vmatprep.subr.bf16.mxu1 %v712_v29  ;;  %p831_p4 = por %p830_p3, %p829_p2 }
  0x43   :  { %322 = vmatpush1.bf16.msra.mxu0 %v714_v30  ;;  %p832_p5 = pnand %p831_p4, %p825_p1 }
  0x44   :  { %541 = vmatpush1.bf16.msra.mxu1 %v715_v31  ;;  %323 = vmatprep.subr.bf16.mxu0 %v716_v32 }
  0x45   :  { %542 = vmatprep.subr.bf16.mxu1 %v718_v33 }
  0x47   :  { %324 = vmatpush2.bf16.msra.mxu0 %v720_v34 }
  0x48   :  { %543 = vmatpush2.bf16.msra.mxu1 %v721_v35  ;;  %325 = vmatprep.subr.bf16.mxu0 %v722_v36 }
  0x49   :  { %544 = vmatprep.subr.bf16.mxu1 %v724_v38 }
  0x4b   :  { %326 = vmatpush2.bf16.msra.mxu0 %v726_v39 }
  0x4c   :  { %545 = vmatpush2.bf16.msra.mxu1 %v727_v40  ;;  %327 = vmatprep.subr.bf16.mxu0 %v728_v41 }
  0x4d   :  { %546 = vmatprep.subr.bf16.mxu1 %v730_v43 }
  0x4f   :  { %328 = vmatpush2.bf16.msra.mxu0 %v732_v44 }
  0x50   :  { %547 = vmatpush2.bf16.msra.mxu1 %v733_v45  ;;  %329 = vmatprep.subr.bf16.mxu0 %v734_v46 }
  0x51   :  { %548 = vmatprep.subr.bf16.mxu1 %v736_v48 }
  0x53   :  { %330 = vmatpush2.bf16.msra.mxu0 %v738_v52 }
  0x54   :  { %549 = vmatpush2.bf16.msra.mxu1 %v739_v53  ;;  %331 = vmatprep.subr.bf16.mxu0 %v740_v55 }
  0x55   :  { %550 = vmatprep.subr.bf16.mxu1 %v742_v56 }
  0x57   :  { %332 = vmatpush2.bf16.msra.mxu0 %v744_v58 }
  0x58   :  { %551 = vmatpush2.bf16.msra.mxu1 %v745_v59  ;;  %333 = vmatprep.subr.bf16.mxu0 %v746_v61 }
  0x59   :  { %552 = vmatprep.subr.bf16.mxu1 %v748_v62 }
  0x5b   :  { %334 = vmatpush2.bf16.msra.mxu0 %v750_v0 }
  0x5c   :  { %553 = vmatpush2.bf16.msra.mxu1 %v751_v1  ;;  %335 = vmatprep.subr.bf16.mxu0 %v752_v2 }
  0x5d   :  { %554 = vmatprep.subr.bf16.mxu1 %v754_v3 }
  0x5f   :  { %336 = vmatpush2.bf16.msra.mxu0 %v756_v5 }
  0x60   :  { %555 = vmatpush2.bf16.msra.mxu1 %v757_v6  ;;  %337 = vmatprep.subr.bf16.mxu0 %v758_v8 }
  0x61   :  { %556 = vmatprep.subr.bf16.mxu1 %v760_v9 }
  0x63   :  { %338 = vmatpush2.bf16.msra.mxu0 %v762_v11 }
  0x64   :  { %557 = vmatpush2.bf16.msra.mxu1 %v763_v12 }
  0x66   :  { %340 = vmatmul.mubr.bf16.vlgmr.msra.gmra.mxu0 %v113_v13 }
  0x67   :  { %559 = vmatmul.mubr.bf16.vlgmr.msra.gmra.mxu1 %v79_v14 }
 0x126   :  { %v341_v19 = vpop.f32.mrf.mxu0 }
 0x127   :  { %v560_v20 = vpop.f32.mrf.mxu1  ;;  %v364_v21 = vmul.f32 %v357_v16, %v341_v19 }
 0x128   :  { %v343_v23 = vpop.f32.mrf.mxu0 }
 0x129   :  { %v562_v24 = vpop.f32.mrf.mxu1  ;;  %v561_v25 = vadd.f32 %v560_v20, %v364_v21  ;;  %v365_v26 = vmul.f32 %v361_v18, %v343_v23 }
 0x12a   :  { %v345_v28 = vpop.f32.mrf.mxu0 }
 0x12b   :  { %v564_v29 = vpop.f32.mrf.mxu1  ;;  %v578_v30 = vadd.f32 %v571_v22, %v561_v25  ;;  %v563_v31 = vadd.f32 %v562_v24, %v365_v26 }
 0x12c   :  { %v346_v32 = vpop.f32.mrf.mxu0 }
 0x12d   :  { %v565_v33 = vpop.f32.mrf.mxu1  ;;  %580 = vst [vmem:[#allocation8] sm:$0xff] %v578_v30  ;;  %v579_v34 = vadd.f32 %v575_v27, %v563_v31 }
 0x12f   :  { %581 = vst [vmem:[#allocation8 + $0x8] sm:$0xff] %v579_v34 }
 0x130   :  { %835 = shalt.err (!%p832_p5)
}
 0x131   :  { %591 = dma.vmem_to_hbm [thread:$0]  %s589_s16, 256, %s923_s6, [#allocation4]  }
 0x132   :  { %848 = dma.done.wait [#allocation4], 256  }
 0x133   :  { %849 = vsyncadd [#allocation4], 4294967040 }
 0x134   :  { %595 = vsyncpa [#allocation3], 1 }
 0x135   :  { %596 = vsyncpa [#allocation6], 1 }
 0x136   :  { %597 = vsyncpa [#allocation4], 1 }

</bundles_post_ra>
